<compile_context>
chip_gen: v6e
topology: v6e:2x2x1
jax: 0.10.0
libtpu: 0.0.40
codegen_flags: <defaults>
</compile_context>

<pallas_src>
import functools

import jax
import jax.numpy as jnp
from jax.experimental import pallas as pl
from jax.experimental.pallas import tpu as pltpu

K_IN = 28 * 28       # 784 — full-extent last dim of the x BlockSpec (no K padding)
H1, H2 = 512, 256
N_OUT = 10
N_PAD = 128          # lane-dense output width; wrapper slices back to 10
_BIAS_ROWS = 8       # biases replicated to a full sublane group


def mlp_kernel(x_ref, w1_ref, b1_ref, w2_ref, b2_ref, w3_ref, b3_ref, o_ref):
    """Fused 3-layer MLP: relu(relu(x@W1+b1)@W2+b2)@W3+b3 (bf16 MXU, f32 acc)."""
    # x arrives as f32 straight from HBM; cast to bf16 only for the MXU.
    x = x_ref[...].astype(jnp.bfloat16)                                    # (TB, 784)
    h1 = jnp.dot(x, w1_ref[...], preferred_element_type=jnp.float32) + b1_ref[0:1, :]
    h1 = jnp.maximum(h1, 0.0).astype(jnp.bfloat16)                         # ReLU in f32, bf16 for MXU
    h2 = jnp.dot(h1, w2_ref[...], preferred_element_type=jnp.float32) + b2_ref[0:1, :]
    h2 = jnp.maximum(h2, 0.0).astype(jnp.bfloat16)
    o_ref[...] = (
        jnp.dot(h2, w3_ref[...], preferred_element_type=jnp.float32) + b3_ref[0:1, :]
    ).astype(o_ref.dtype)                                                  # (TB, 128) lane-dense


def prepare_params(params):
    """One-time conversion of f32 params into the kernel layout.

    Weights -> bf16 (in, out) for the MXU (w1 is NOT K-padded); biases -> f32
    replicated to 8 sublanes; the last layer is padded to 128 output lanes for
    unmasked lane-dense stores.
    """
    def rep(b):
        b = b.astype(jnp.float32).reshape(1, -1)
        return jnp.broadcast_to(b, (_BIAS_ROWS, b.shape[-1]))

    w1 = params["w1"].astype(jnp.bfloat16)                                          # (784, 512)
    w2 = params["w2"].astype(jnp.bfloat16)                                          # (512, 256)
    w3 = jnp.pad(params["w3"].astype(jnp.bfloat16), ((0, 0), (0, N_PAD - N_OUT)))   # (256, 128)
    b3 = jnp.pad(params["b3"].astype(jnp.float32).reshape(1, -1),
                 ((0, 0), (0, N_PAD - N_OUT)))                                      # (1, 128)
    return {
        "w1": w1, "b1": rep(params["b1"]),
        "w2": w2, "b2": rep(params["b2"]),
        "w3": w3, "b3": jnp.broadcast_to(b3, (_BIAS_ROWS, N_PAD)),
    }


def _choose_block_b(batch):
    """Adaptive batch tile: latency-sized for small B, >=2 tiles for large B."""
    if batch <= 128:
        # latency path: one right-sized tile (multiple of 16 for bf16 packing)
        return max(16, -(-batch // 16) * 16)
    # throughput path: biggest tile that still leaves >= 2 grid steps, so
    # dimension_semantics=("parallel",) can shard batch tiles across v7x's 2 TCs
    for cand in (1024, 512, 256, 128):
        if batch >= 2 * cand:
            return cand
    return 128


@functools.partial(jax.jit, static_argnames=("block_b",))
def _forward_impl(x_nchw, kparams, block_b):
    B = x_nchw.shape[0]
    x = x_nchw.reshape(B, K_IN)                       # nn.Flatten; stays f32 — no cast/pad HBM pass

    b_pad = pl.cdiv(B, block_b) * block_b             # only ragged batches pay a (small) pad copy
    if b_pad != B:
        x = jnp.pad(x, ((0, b_pad - B), (0, 0)))
    grid = (b_pad // block_b,)

    w1, b1 = kparams["w1"], kparams["b1"]
    w2, b2 = kparams["w2"], kparams["b2"]
    w3, b3 = kparams["w3"], kparams["b3"]

    # Weights/biases (~1 MiB total) are fully VMEM-resident: constant index_map
    # -> DMA'd once, reused every grid step (no multi-buffering needed).
    full = lambda shape: pl.BlockSpec(shape, lambda i: (0, 0))

    out = pl.pallas_call(
        mlp_kernel,
        out_shape=jax.ShapeDtypeStruct((b_pad, N_PAD), jnp.float32),
        grid_spec=pltpu.PrefetchScalarGridSpec(
            num_scalar_prefetch=0,
            grid=grid,
            in_specs=[
                pl.BlockSpec((block_b, K_IN), lambda i: (i, 0)),   # full-extent K=784 is legal
                full(w1.shape), full(b1.shape),
                full(w2.shape), full(b2.shape),
                full(w3.shape), full(b3.shape),
            ],
            out_specs=pl.BlockSpec((block_b, N_PAD), lambda i: (i, 0)),
        ),
        compiler_params=pltpu.CompilerParams(
            # batch tiles shard across v7x's 2 TensorCores; default scoped-VMEM
            # limit (32 MiB) already covers block_b=1024 (~15 MiB footprint).
            dimension_semantics=("parallel",),
        ),
    )(x, w1, b1, w2, b2, w3, b3)

    return out[:B, :N_OUT]                            # drop batch + lane padding


def simple_nn_forward(x_nchw, kparams):
    """Pallas implementation of SimpleNN.forward: (B,1,28,28) f32 -> (B,10) f32."""
    return _forward_impl(x_nchw, kparams, block_b=_choose_block_b(x_nchw.shape[0]))


def init_params(key):
    """Deterministic init mimicking nn.Linear default: U(-1/sqrt(fan_in), +)."""
    def linear(key, fan_in, fan_out):
        kw, kb = jax.random.split(key)
        bound = 1.0 / jnp.sqrt(fan_in)
        w = jax.random.uniform(kw, (fan_in, fan_out), jnp.float32, -bound, bound)
        b = jax.random.uniform(kb, (1, fan_out), jnp.float32, -bound, bound)
        return w, b

    k1, k2, k3 = jax.random.split(key, 3)
    w1, b1 = linear(k1, K_IN, H1)
    w2, b2 = linear(k2, H1, H2)
    w3, b3 = linear(k3, H2, N_OUT)
    return {"w1": w1, "b1": b1, "w2": w2, "b2": b2, "w3": w3, "b3": b3}


def reference_forward(x_nchw, params):
    """Pure-JAX f32 reference of the PyTorch forward for verification."""
    x = x_nchw.reshape(x_nchw.shape[0], -1)
    h1 = jnp.maximum(x @ params["w1"] + params["b1"], 0.0)
    h2 = jnp.maximum(h1 @ params["w2"] + params["b2"], 0.0)
    return h2 @ params["w3"] + params["b3"]


if __name__ == "__main__":
    key = jax.random.PRNGKey(0)
    kx, kp = jax.random.split(key)

    batch = 8
    x = jax.random.normal(kx, (batch, 1, 28, 28), dtype=jnp.float32)  # NCHW
    params = init_params(kp)
    kparams = prepare_params(params)                  # one-time bf16 / padded layout

    out = simple_nn_forward(x, kparams)
    out = jax.block_until_ready(out)

    ref = reference_forward(x, params)
    assert out.shape == (batch, 10), out.shape
    # bf16 MXU inputs with f32 accumulation -> a few 1e-3 of absolute error.
    assert jnp.allclose(out, ref, atol=5e-2, rtol=5e-2), "mismatch vs reference"

    print("KERNEL_OK")
</pallas_src>

<mosaic_0001>
module attributes {stable_mosaic.version = 11 : i64} {
  func.func @mlp_kernel(%arg0: i32, %arg1: memref<16x784xf32, #tpu.memory_space<vmem>>, %arg2: memref<784x512xbf16, #tpu.memory_space<vmem>>, %arg3: memref<8x512xf32, #tpu.memory_space<vmem>>, %arg4: memref<512x256xbf16, #tpu.memory_space<vmem>>, %arg5: memref<8x256xf32, #tpu.memory_space<vmem>>, %arg6: memref<256x128xbf16, #tpu.memory_space<vmem>>, %arg7: memref<8x128xf32, #tpu.memory_space<vmem>>, %arg8: memref<16x128xf32, #tpu.memory_space<vmem>>) attributes {dimension_semantics = [#tpu.dimension_semantics<parallel>], iteration_bounds = array<i64: 1>, scalar_prefetch = 0 : i64, scratch_operands = 0 : i64, tpu.core_type = #tpu.core_type<tc>, window_params = [{transform_indices = @transform_0, window_bounds = array<i64: 16, 784>}, {pipeline_mode = #tpu.pipeline_mode<synchronous>, transform_indices = @transform_1, window_bounds = array<i64: 784, 512>}, {pipeline_mode = #tpu.pipeline_mode<synchronous>, transform_indices = @transform_2, window_bounds = array<i64: 8, 512>}, {pipeline_mode = #tpu.pipeline_mode<synchronous>, transform_indices = @transform_3, window_bounds = array<i64: 512, 256>}, {pipeline_mode = #tpu.pipeline_mode<synchronous>, transform_indices = @transform_4, window_bounds = array<i64: 8, 256>}, {pipeline_mode = #tpu.pipeline_mode<synchronous>, transform_indices = @transform_5, window_bounds = array<i64: 256, 128>}, {pipeline_mode = #tpu.pipeline_mode<synchronous>, transform_indices = @transform_6, window_bounds = array<i64: 8, 128>}, {transform_indices = @transform_7, window_bounds = array<i64: 16, 128>}]} {
    %c0 = arith.constant 0 : index
    %c0_0 = arith.constant 0 : index
    %0 = vector.load %arg1[%c0, %c0_0] : memref<16x784xf32, #tpu.memory_space<vmem>>, vector<16x784xf32>
    %1 = arith.truncf %0 : vector<16x784xf32> to vector<16x784xbf16>
    %c0_1 = arith.constant 0 : index
    %c0_2 = arith.constant 0 : index
    %2 = vector.load %arg2[%c0_1, %c0_2] : memref<784x512xbf16, #tpu.memory_space<vmem>>, vector<784x512xbf16>
    %cst = arith.constant dense<0.000000e+00> : vector<16x512xf32>
    %3 = tpu.matmul %1, %2, %cst {dimension_numbers = #tpu.dot_dimension_numbers<[1], [0], [0], [1], [0, 0, 1, 1], [], []>} : vector<16x784xbf16>, vector<784x512xbf16>, vector<16x512xf32> -> vector<16x512xf32>
    %c0_3 = arith.constant 0 : index
    %c0_4 = arith.constant 0 : index
    %4 = vector.load %arg3[%c0_3, %c0_4] : memref<8x512xf32, #tpu.memory_space<vmem>>, vector<1x512xf32>
    %5 = vector.broadcast %4 : vector<1x512xf32> to vector<16x512xf32>
    %6 = arith.addf %3, %5 : vector<16x512xf32>
    %cst_5 = arith.constant 0.000000e+00 : f32
    %7 = vector.broadcast %cst_5 : f32 to vector<16x512xf32>
    %8 = arith.maximumf %6, %7 : vector<16x512xf32>
    %9 = arith.truncf %8 : vector<16x512xf32> to vector<16x512xbf16>
    %c0_6 = arith.constant 0 : index
    %c0_7 = arith.constant 0 : index
    %10 = vector.load %arg4[%c0_6, %c0_7] : memref<512x256xbf16, #tpu.memory_space<vmem>>, vector<512x256xbf16>
    %cst_8 = arith.constant dense<0.000000e+00> : vector<16x256xf32>
    %11 = tpu.matmul %9, %10, %cst_8 {dimension_numbers = #tpu.dot_dimension_numbers<[1], [0], [0], [1], [0, 0, 1, 1], [], []>} : vector<16x512xbf16>, vector<512x256xbf16>, vector<16x256xf32> -> vector<16x256xf32>
    %c0_9 = arith.constant 0 : index
    %c0_10 = arith.constant 0 : index
    %12 = vector.load %arg5[%c0_9, %c0_10] : memref<8x256xf32, #tpu.memory_space<vmem>>, vector<1x256xf32>
    %13 = vector.broadcast %12 : vector<1x256xf32> to vector<16x256xf32>
    %14 = arith.addf %11, %13 : vector<16x256xf32>
    %cst_11 = arith.constant 0.000000e+00 : f32
    %15 = vector.broadcast %cst_11 : f32 to vector<16x256xf32>
    %16 = arith.maximumf %14, %15 : vector<16x256xf32>
    %17 = arith.truncf %16 : vector<16x256xf32> to vector<16x256xbf16>
    %c0_12 = arith.constant 0 : index
    %c0_13 = arith.constant 0 : index
    %18 = vector.load %arg6[%c0_12, %c0_13] : memref<256x128xbf16, #tpu.memory_space<vmem>>, vector<256x128xbf16>
    %cst_14 = arith.constant dense<0.000000e+00> : vector<16x128xf32>
    %19 = tpu.matmul %17, %18, %cst_14 {dimension_numbers = #tpu.dot_dimension_numbers<[1], [0], [0], [1], [0, 0, 1, 1], [], []>} : vector<16x256xbf16>, vector<256x128xbf16>, vector<16x128xf32> -> vector<16x128xf32>
    %c0_15 = arith.constant 0 : index
    %c0_16 = arith.constant 0 : index
    %20 = vector.load %arg7[%c0_15, %c0_16] : memref<8x128xf32, #tpu.memory_space<vmem>>, vector<1x128xf32>
    %21 = vector.broadcast %20 : vector<1x128xf32> to vector<16x128xf32>
    %22 = arith.addf %19, %21 : vector<16x128xf32>
    %c0_17 = arith.constant 0 : index
    %c0_18 = arith.constant 0 : index
    %23 = vector.load %arg8[%c0_17, %c0_18] : memref<16x128xf32, #tpu.memory_space<vmem>>, vector<16x128xf32>
    tpu.vector_store %arg8[%c0_17, %c0_18], %22 {strides = array<i32>} : memref<16x128xf32, #tpu.memory_space<vmem>>, vector<16x128xf32>,
    return
  }
  func.func @transform_0(%arg0: i32) -> (i32, i32) {
    %c0_i32 = arith.constant 0 : i32
    %c0_i32_0 = arith.constant 0 : i32
    return %arg0, %c0_i32 : i32, i32
  }
  func.func @transform_1(%arg0: i32) -> (i32, i32) {
    %c0_i32 = arith.constant 0 : i32
    %c0_i32_0 = arith.constant 0 : i32
    %c0_i32_1 = arith.constant 0 : i32
    return %c0_i32, %c0_i32_0 : i32, i32
  }
  func.func @transform_2(%arg0: i32) -> (i32, i32) {
    %c0_i32 = arith.constant 0 : i32
    %c0_i32_0 = arith.constant 0 : i32
    %c0_i32_1 = arith.constant 0 : i32
    return %c0_i32, %c0_i32_0 : i32, i32
  }
  func.func @transform_3(%arg0: i32) -> (i32, i32) {
    %c0_i32 = arith.constant 0 : i32
    %c0_i32_0 = arith.constant 0 : i32
    %c0_i32_1 = arith.constant 0 : i32
    return %c0_i32, %c0_i32_0 : i32, i32
  }
  func.func @transform_4(%arg0: i32) -> (i32, i32) {
    %c0_i32 = arith.constant 0 : i32
    %c0_i32_0 = arith.constant 0 : i32
    %c0_i32_1 = arith.constant 0 : i32
    return %c0_i32, %c0_i32_0 : i32, i32
  }
  func.func @transform_5(%arg0: i32) -> (i32, i32) {
    %c0_i32 = arith.constant 0 : i32
    %c0_i32_0 = arith.constant 0 : i32
    %c0_i32_1 = arith.constant 0 : i32
    return %c0_i32, %c0_i32_0 : i32, i32
  }
  func.func @transform_6(%arg0: i32) -> (i32, i32) {
    %c0_i32 = arith.constant 0 : i32
    %c0_i32_0 = arith.constant 0 : i32
    %c0_i32_1 = arith.constant 0 : i32
    return %c0_i32, %c0_i32_0 : i32, i32
  }
  func.func @transform_7(%arg0: i32) -> (i32, i32) {
    %c0_i32 = arith.constant 0 : i32
    %c0_i32_0 = arith.constant 0 : i32
    return %arg0, %c0_i32 : i32, i32
  }
}

</mosaic_0001>

<bundles_post_ra>
// kernel: _forward_impl.1
= control target key start
LH: loop header
LB: loop body
LE: loop exit
PB: predicated region body
PF: predicated region fallthrough
CT: control target
= control target key end

     0   :  { %12 = vsyncpa [#allocation3], 0  ;;  %s3022_s24 = smov [#allocation2]   ;;  %s3412_s0 = inlined_call_operand.vmem [shape: f32[16,784], index: 0, kind: input, shape index: {}]   ;;  %s3413_s1 = inlined_call_operand.hbm [shape: bf16[784,512], index: 1, kind: input, shape index: {}]   ;;  %s3414_s2 = inlined_call_operand.vmem [shape: f32[8,512], index: 2, kind: input, shape index: {}]   ;;  %s3415_s3 = inlined_call_operand.vmem [shape: bf16[512,256], index: 3, kind: input, shape index: {}]   ;;  %s3416_s4 = inlined_call_operand.vmem [shape: f32[8,256], index: 4, kind: input, shape index: {}]   ;;  %s3417_s5 = inlined_call_operand.vmem [shape: bf16[256,128], index: 5, kind: input, shape index: {}]   ;;  %s3418_s6 = inlined_call_operand.vmem [shape: f32[8,128], index: 6, kind: input, shape index: {}]   ;;  %s3419_s7 = inlined_call_operand.vmem [shape: f32[16,128], index: 7, kind: output, shape index: {}]  }
   0x1   :  { %s20_s25 = sshll.u32 %s3022_s24, 4  ;;  %s21_s25 = int_to_ptr.vmem [resolvable:$true] %s20_s25 }
   0x2   :  { %s3008_s26 = scalar_lea.vmem %s21_s25, 25088  ;;  %p3013_p1 = scmp.lt.s32.totalorder %s21_s25, %s21_s25 }
   0x3   :  { %p3009_p0 = scmp.ne.s32.totalorder %s21_s25, %s3008_s26  ;;  %p3014_p2 = scmp.lt.s32.totalorder %s3008_s26, %s3008_s26 }
   0x5   :  { %p3015_p3 = por %p3014_p2, %p3013_p1 }
   0x7   :  { %p3016_p4 = pnand %p3015_p3, %p3009_p0 }
   0x9   :  { %3019 = shalt.err (!%p3016_p4)
}
   0xa   :  { %s3023_s27 = smov 256   ;;  %s3024_s28 = smov 16  }
   0xb   :  { %26 = dma.hbm_to_vmem [thread:$0]  %s3413_s1, 25088, %s21_s25, [#allocation3], %s3023_s27, %s3023_s27, %s3024_s28  }
   0xc   :  { %3020 = dma.done.wait [#allocation3], 25088  }
   0xd   :  { %3021 = vsyncadd [#allocation3], 4294942208  ;;  %v2594_v0 = vld [vmem:[#allocation2 + $0xe4] ss:$16 sps:$4 sm:$0xff]   ;;  %v2598_v2 = vld [vmem:[#allocation2 + $0xe0] ss:$16 sps:$4 sm:$0xff]  }
   0xe   :  { %v2596_v1 = vld [vmem:[#allocation2 + $0x2e4] ss:$16 sps:$4 sm:$0xff]   ;;  %1264 = vmatprep.subr.bf16.mxu0 %v2594_v0  ;;  %v2599_v3 = vld [vmem:[#allocation2 + $0x2e0] ss:$16 sps:$4 sm:$0xff]   ;;  %v42_v46 = vld [vmem:[%s3412_s0 + $0x8] sm:$0xff]  ;;  %vm1260_vm0 = vcmask 130048  }
   0xf   :  { %1307 = vmatprep.subr.bf16.mxu1 %v2596_v1  ;;  %v2600_v4 = vld [vmem:[#allocation2 + $0xc4] ss:$16 sps:$4 sm:$0xff]   ;;  %1265 = vmatpush1.bf16.msra.mxu0 %v2598_v2  ;;  %v2604_v6 = vld [vmem:[#allocation2 + $0xc0] ss:$16 sps:$4 sm:$0xff]   ;;  %v44_v48 = vld [vmem:[%s3412_s0 + $0x18] sm:$0xff] }
  0x10   :  { %1308 = vmatpush1.bf16.msra.mxu1 %v2599_v3  ;;  %v2602_v5 = vld [vmem:[#allocation2 + $0x2c4] ss:$16 sps:$4 sm:$0xff]   ;;  %1266 = vmatprep.subr.bf16.mxu0 %v2600_v4  ;;  %v2605_v7 = vld [vmem:[#allocation2 + $0x2c0] ss:$16 sps:$4 sm:$0xff]  }
  0x11   :  { %1309 = vmatprep.subr.bf16.mxu1 %v2602_v5  ;;  %v2606_v8 = vld [vmem:[#allocation2 + $0xa4] ss:$16 sps:$4 sm:$0xff]   ;;  %v2610_v10 = vld [vmem:[#allocation2 + $0xa0] ss:$16 sps:$4 sm:$0xff]  }
  0x12   :  { %v2608_v9 = vld [vmem:[#allocation2 + $0x2a4] ss:$16 sps:$4 sm:$0xff]   ;;  %v2611_v11 = vld [vmem:[#allocation2 + $0x2a0] ss:$16 sps:$4 sm:$0xff]  }
  0x13   :  { %1267 = vmatpush1.bf16.msra.mxu0 %v2604_v6  ;;  %v2612_v12 = vld [vmem:[#allocation2 + $0x84] ss:$16 sps:$4 sm:$0xff]   ;;  %v2616_v14 = vld [vmem:[#allocation2 + $0x80] ss:$16 sps:$4 sm:$0xff]  }
  0x14   :  { %1310 = vmatpush1.bf16.msra.mxu1 %v2605_v7  ;;  %1268 = vmatprep.subr.bf16.mxu0 %v2606_v8  ;;  %v2614_v13 = vld [vmem:[#allocation2 + $0x284] ss:$16 sps:$4 sm:$0xff]   ;;  %v2617_v15 = vld [vmem:[#allocation2 + $0x280] ss:$16 sps:$4 sm:$0xff]   ;;  %v48_v7 = vld [vmem:[%s3412_s0 + $0x38] sm:$0xff] }
  0x15   :  { %1311 = vmatprep.subr.bf16.mxu1 %v2608_v9  ;;  %v2618_v16 = vld [vmem:[#allocation2 + $0x64] ss:$16 sps:$4 sm:$0xff]   ;;  %v2622_v18 = vld [vmem:[#allocation2 + $0x60] ss:$16 sps:$4 sm:$0xff]   ;;  %v50_v9 = vld [vmem:[%s3412_s0 + $0x48] sm:$0xff] }
  0x16   :  { %v2620_v17 = vld [vmem:[#allocation2 + $0x264] ss:$16 sps:$4 sm:$0xff]   ;;  %v2623_v19 = vld [vmem:[#allocation2 + $0x260] ss:$16 sps:$4 sm:$0xff]  }
  0x17   :  { %1269 = vmatpush1.bf16.msra.mxu0 %v2610_v10  ;;  %v2624_v20 = vld [vmem:[#allocation2 + $0x44] ss:$16 sps:$4 sm:$0xff]   ;;  %v2628_v22 = vld [vmem:[#allocation2 + $0x40] ss:$16 sps:$4 sm:$0xff]  }
  0x18   :  { %1312 = vmatpush1.bf16.msra.mxu1 %v2611_v11  ;;  %1270 = vmatprep.subr.bf16.mxu0 %v2612_v12  ;;  %v2626_v21 = vld [vmem:[#allocation2 + $0x244] ss:$16 sps:$4 sm:$0xff]   ;;  %v2629_v23 = vld [vmem:[#allocation2 + $0x240] ss:$16 sps:$4 sm:$0xff]  }
  0x19   :  { %1313 = vmatprep.subr.bf16.mxu1 %v2614_v13  ;;  %v2630_v24 = vld [vmem:[#allocation2 + $0x24] ss:$16 sps:$4 sm:$0xff]   ;;  %v2634_v26 = vld [vmem:[#allocation2 + $0x20] ss:$16 sps:$4 sm:$0xff]  }
  0x1a   :  { %v2632_v25 = vld [vmem:[#allocation2 + $0x224] ss:$16 sps:$4 sm:$0xff]   ;;  %v2635_v27 = vld [vmem:[#allocation2 + $0x220] ss:$16 sps:$4 sm:$0xff]  }
  0x1b   :  { %1271 = vmatpush1.bf16.msra.mxu0 %v2616_v14  ;;  %v2636_v28 = vld [vmem:[#allocation2 + $0x4] ss:$16 sps:$4 sm:$0xff]   ;;  %v2640_v30 = vld [vmem:[#allocation2] ss:$16 sps:$4 sm:$0xff]  }
  0x1c   :  { %1314 = vmatpush1.bf16.msra.mxu1 %v2617_v15  ;;  %1272 = vmatprep.subr.bf16.mxu0 %v2618_v16  ;;  %v2638_v29 = vld [vmem:[#allocation2 + $0x204] ss:$16 sps:$4 sm:$0xff]   ;;  %v2641_v31 = vld [vmem:[#allocation2 + $0x200] ss:$16 sps:$4 sm:$0xff]  }
  0x1d   :  { %1315 = vmatprep.subr.bf16.mxu1 %v2620_v17  ;;  %v2642_v32 = vld [vmem:[#allocation2 + $0x1e4] ss:$16 sps:$4 sm:$0xff]   ;;  %v2646_v34 = vld [vmem:[#allocation2 + $0x1e0] ss:$16 sps:$4 sm:$0xff]   ;;  %v2701_v17 = vld [vmem:[#allocation2 + $0xec] ss:$16 sps:$4 sm:$0xff]  }
  0x1e   :  { %v2644_v33 = vld [vmem:[#allocation2 + $0x3e4] ss:$16 sps:$4 sm:$0xff]   ;;  %v2647_v35 = vld [vmem:[#allocation2 + $0x3e0] ss:$16 sps:$4 sm:$0xff]  }
  0x1f   :  { %1273 = vmatpush1.bf16.msra.mxu0 %v2622_v18  ;;  %v2648_v36 = vld [vmem:[#allocation2 + $0x1c4] ss:$16 sps:$4 sm:$0xff]   ;;  %v2652_v38 = vld [vmem:[#allocation2 + $0x1c0] ss:$16 sps:$4 sm:$0xff]  }
  0x20   :  { %1316 = vmatpush1.bf16.msra.mxu1 %v2623_v19  ;;  %1274 = vmatprep.subr.bf16.mxu0 %v2624_v20  ;;  %v2650_v37 = vld [vmem:[#allocation2 + $0x3c4] ss:$16 sps:$4 sm:$0xff]   ;;  %v2653_v39 = vld [vmem:[#allocation2 + $0x3c0] ss:$16 sps:$4 sm:$0xff]   ;;  %v54_v20 = vld [vmem:[%s3412_s0 + $0x68] sm:$0xff] }
  0x21   :  { %1317 = vmatprep.subr.bf16.mxu1 %v2626_v21  ;;  %v2654_v40 = vld [vmem:[#allocation2 + $0x1a4] ss:$16 sps:$4 sm:$0xff]   ;;  %v2658_v42 = vld [vmem:[#allocation2 + $0x1a0] ss:$16 sps:$4 sm:$0xff]   ;;  %v3025_v21 = vmov 0  }
  0x22   :  { %v2656_v41 = vld [vmem:[#allocation2 + $0x3a4] ss:$16 sps:$4 sm:$0xff]   ;;  %v2659_v43 = vld [vmem:[#allocation2 + $0x3a0] ss:$16 sps:$4 sm:$0xff]  }
  0x23   :  { %1275 = vmatpush1.bf16.msra.mxu0 %v2628_v22  ;;  %v2660_v44 = vld [vmem:[#allocation2 + $0x184] ss:$16 sps:$4 sm:$0xff]   ;;  %v2664_v50 = vld [vmem:[#allocation2 + $0x180] ss:$16 sps:$4 sm:$0xff]  }
  0x24   :  { %1318 = vmatpush1.bf16.msra.mxu1 %v2629_v23  ;;  %1276 = vmatprep.subr.bf16.mxu0 %v2630_v24  ;;  %v2662_v45 = vld [vmem:[#allocation2 + $0x384] ss:$16 sps:$4 sm:$0xff]   ;;  %v2665_v51 = vld [vmem:[#allocation2 + $0x380] ss:$16 sps:$4 sm:$0xff]   ;;  %v2699_v24 = vld [vmem:[#allocation2 + $0xe8] ss:$16 sps:$4 sm:$0xff]  }
  0x25   :  { %1319 = vmatprep.subr.bf16.mxu1 %v2632_v25  ;;  %v49_v47 = vld [vmem:[%s3412_s0 + $0x40] sm:$0xff]  ;;  %v51_v49 = vld [vmem:[%s3412_s0 + $0x50] sm:$0xff] }
  0x26   :  { %v2666_v52 = vld [vmem:[#allocation2 + $0x164] ss:$16 sps:$4 sm:$0xff]   ;;  %v3081_v53 = vpack.c.bf16 %v49_v47, %v42_v46  ;;  %v3083_v54 = vpack.c.bf16 %v51_v49, %v44_v48  ;;  %v2670_v56 = vld [vmem:[#allocation2 + $0x160] ss:$16 sps:$4 sm:$0xff]   ;;  %v2729_v47 = vld [vmem:[#allocation2 + $0x48] ss:$16 sps:$4 sm:$0xff]  }
  0x27   :  { %1277 = vmatpush1.bf16.msra.mxu0 %v2634_v26  ;;  %v2668_v55 = vld [vmem:[#allocation2 + $0x364] ss:$16 sps:$4 sm:$0xff]   ;;  %v2671_v57 = vld [vmem:[#allocation2 + $0x360] ss:$16 sps:$4 sm:$0xff]   ;;  %v2707_v26 = vld [vmem:[#allocation2 + $0xcc] ss:$16 sps:$4 sm:$0xff]  }
  0x28   :  { %1320 = vmatpush1.bf16.msra.mxu1 %v2635_v27  ;;  %1278 = vmatprep.subr.bf16.mxu0 %v2636_v28  ;;  %v2672_v58 = vld [vmem:[#allocation2 + $0x144] ss:$16 sps:$4 sm:$0xff]   ;;  %v2676_v60 = vld [vmem:[#allocation2 + $0x140] ss:$16 sps:$4 sm:$0xff]   ;;  %v2705_v28 = vld [vmem:[#allocation2 + $0xc8] ss:$16 sps:$4 sm:$0xff]  }
  0x29   :  { %1321 = vmatprep.subr.bf16.mxu1 %v2638_v29  ;;  %1296 = vmatprep.mubr.bf16.mxu0 %v3081_v53  ;;  %v2674_v59 = vld [vmem:[#allocation2 + $0x344] ss:$16 sps:$4 sm:$0xff]   ;;  %v2677_v61 = vld [vmem:[#allocation2 + $0x340] ss:$16 sps:$4 sm:$0xff]   ;;  %v2737_v49 = vld [vmem:[#allocation2 + $0x2c] ss:$16 sps:$4 sm:$0xff]  }
  0x2a   :  { %1339 = vmatprep.mubr.bf16.mxu1 %v3083_v54  ;;  %v2678_v62 = vld [vmem:[#allocation2 + $0x124] ss:$16 sps:$4 sm:$0xff]   ;;  %v2682_v0 = vld [vmem:[#allocation2 + $0x120] ss:$16 sps:$4 sm:$0xff]  }
  0x2b   :  { %1279 = vmatpush1.bf16.msra.mxu0 %v2640_v30  ;;  %v2680_v63 = vld [vmem:[#allocation2 + $0x324] ss:$16 sps:$4 sm:$0xff]   ;;  %v2683_v1 = vld [vmem:[#allocation2 + $0x320] ss:$16 sps:$4 sm:$0xff]   ;;  %v2713_v30 = vld [vmem:[#allocation2 + $0xac] ss:$16 sps:$4 sm:$0xff]  }
  0x2c   :  { %1322 = vmatpush1.bf16.msra.mxu1 %v2641_v31  ;;  %1280 = vmatprep.subr.bf16.mxu0 %v2642_v32  ;;  %v2684_v2 = vld [vmem:[#allocation2 + $0x104] ss:$16 sps:$4 sm:$0xff]   ;;  %v2688_v4 = vld [vmem:[#allocation2 + $0x100] ss:$16 sps:$4 sm:$0xff]   ;;  %v2711_v32 = vld [vmem:[#allocation2 + $0xa8] ss:$16 sps:$4 sm:$0xff]  }
  0x2d   :  { %1323 = vmatprep.subr.bf16.mxu1 %v2644_v33  ;;  %v2686_v3 = vld [vmem:[#allocation2 + $0x304] ss:$16 sps:$4 sm:$0xff]   ;;  %v2689_v5 = vld [vmem:[#allocation2 + $0x300] ss:$16 sps:$4 sm:$0xff]  }
  0x2e   :  { %v41_v6 = vld [vmem:[%s3412_s0] sm:$0xff]  ;;  %v43_v8 = vld [vmem:[%s3412_s0 + $0x10] sm:$0xff] }
  0x2f   :  { %1281 = vmatpush2.bf16.msra.mxu0 %v2646_v34  ;;  %v2692_v10 = vld [vmem:[#allocation2 + $0x4e4] ss:$16 sps:$4 sm:$0xff]   ;;  %v3099_v12 = vpack.c.bf16 %v48_v7, %v41_v6  ;;  %v3101_v13 = vpack.c.bf16 %v50_v9, %v43_v8  ;;  %v2690_v14 = vld [vmem:[#allocation2 + $0x4e0] ss:$16 sps:$4 sm:$0xff]   ;;  %v2719_v34 = vld [vmem:[#allocation2 + $0x8c] ss:$16 sps:$4 sm:$0xff]  }
  0x30   :  { %1324 = vmatpush2.bf16.msra.mxu1 %v2647_v35  ;;  %1282 = vmatprep.subr.bf16.mxu0 %v2648_v36  ;;  %v2695_v11 = vld [vmem:[#allocation2 + $0x604] ss:$16 sps:$4 sm:$0xff]   ;;  %v2693_v15 = vld [vmem:[#allocation2 + $0x600] ss:$16 sps:$4 sm:$0xff]   ;;  %v2717_v36 = vld [vmem:[#allocation2 + $0x88] ss:$16 sps:$4 sm:$0xff]  }
  0x31   :  { %1325 = vmatprep.subr.bf16.mxu1 %v2650_v37  ;;  %v2698_v16 = vld [vmem:[#allocation2 + $0x4c4] ss:$16 sps:$4 sm:$0xff]   ;;  %v2696_v18 = vld [vmem:[#allocation2 + $0x4c0] ss:$16 sps:$4 sm:$0xff]   ;;  %v2767_v6 = vld [vmem:[#allocation2 + $0x18c] ss:$16 sps:$4 sm:$0xff]  }
  0x32   :  { %v47_v19 = vld [vmem:[%s3412_s0 + $0x30] sm:$0xff]  ;;  %v2765_v8 = vld [vmem:[#allocation2 + $0x188] ss:$16 sps:$4 sm:$0xff]  }
  0x33   :  { %1283 = vmatpush2.bf16.msra.mxu0 %v2652_v38  ;;  %v2704_v22 = vld [vmem:[#allocation2 + $0x4a4] ss:$16 sps:$4 sm:$0xff]   ;;  %v3112_v23 = vpack.c.bf16 %v54_v20, %v47_v19  ;;  %v2702_v25 = vld [vmem:[#allocation2 + $0x4a0] ss:$16 sps:$4 sm:$0xff]   ;;  %v2725_v38 = vld [vmem:[#allocation2 + $0x6c] ss:$16 sps:$4 sm:$0xff]  }
  0x34   :  { %1326 = vmatpush2.bf16.msra.mxu1 %v2653_v39  ;;  %1284 = vmatprep.subr.bf16.mxu0 %v2654_v40  ;;  %v2710_v27 = vld [vmem:[#allocation2 + $0x484] ss:$16 sps:$4 sm:$0xff]   ;;  %v2708_v29 = vld [vmem:[#allocation2 + $0x480] ss:$16 sps:$4 sm:$0xff]   ;;  %v2723_v40 = vld [vmem:[#allocation2 + $0x68] ss:$16 sps:$4 sm:$0xff]  }
  0x35   :  { %1327 = vmatprep.subr.bf16.mxu1 %v2656_v41  ;;  %v2716_v31 = vld [vmem:[#allocation2 + $0x464] ss:$16 sps:$4 sm:$0xff]   ;;  %v2714_v33 = vld [vmem:[#allocation2 + $0x460] ss:$16 sps:$4 sm:$0xff]   ;;  %v46_v41 = vld [vmem:[%s3412_s0 + $0x28] sm:$0xff] }
  0x36   :  { %v2722_v35 = vld [vmem:[#allocation2 + $0x444] ss:$16 sps:$4 sm:$0xff]   ;;  %v2720_v37 = vld [vmem:[#allocation2 + $0x440] ss:$16 sps:$4 sm:$0xff]  }
  0x37   :  { %1285 = vmatpush2.bf16.msra.mxu0 %v2658_v42  ;;  %v2728_v39 = vld [vmem:[#allocation2 + $0x424] ss:$16 sps:$4 sm:$0xff]   ;;  %v2732_v48 = vld [vmem:[#allocation2 + $0x400] ss:$16 sps:$4 sm:$0xff]  }
  0x38   :  { %1328 = vmatpush2.bf16.msra.mxu1 %v2659_v43  ;;  %1286 = vmatprep.subr.bf16.mxu0 %v2660_v44  ;;  %v53_v42 = vld [vmem:[%s3412_s0 + $0x60] sm:$0xff] }
  0x39   :  { %1329 = vmatprep.subr.bf16.mxu1 %v2662_v45  ;;  %v2726_v43 = vld [vmem:[#allocation2 + $0x420] ss:$16 sps:$4 sm:$0xff]   ;;  %v3123_v44 = vpack.c.bf16 %v53_v42, %v46_v41  ;;  %v2731_v45 = vld [vmem:[#allocation2 + $0x4c] ss:$16 sps:$4 sm:$0xff]   ;;  %v2734_v46 = vld [vmem:[#allocation2 + $0x404] ss:$16 sps:$4 sm:$0xff]  }
  0x3a   :  { %v2770_v7 = vld [vmem:[#allocation2 + $0x544] ss:$16 sps:$4 sm:$0xff]   ;;  %v2768_v9 = vld [vmem:[#allocation2 + $0x540] ss:$16 sps:$4 sm:$0xff]   ;;  %v2809_v41 = vld [vmem:[#allocation2 + $0x4ac] ss:$16 sps:$4 sm:$0xff]  }
  0x3b   :  { %1287 = vmatpush2.bf16.msra.mxu0 %v2664_v50  ;;  %v2740_v50 = vld [vmem:[#allocation2 + $0x5e4] ss:$16 sps:$4 sm:$0xff]   ;;  %v2780_v19 = vld [vmem:[#allocation2 + $0x500] ss:$16 sps:$4 sm:$0xff]   ;;  %v2812_v42 = vld [vmem:[#allocation2 + $0x26c] ss:$16 sps:$4 sm:$0xff]  }
  0x3c   :  { %1330 = vmatpush2.bf16.msra.mxu1 %v2665_v51  ;;  %1288 = vmatprep.subr.bf16.mxu0 %v2666_v52  ;;  %v2735_v51 = vld [vmem:[#allocation2 + $0x28] ss:$16 sps:$4 sm:$0xff]   ;;  %v2738_v52 = vld [vmem:[#allocation2 + $0x5e0] ss:$16 sps:$4 sm:$0xff]  }
  0x3d   :  { %1331 = vmatprep.subr.bf16.mxu1 %v2668_v55  ;;  %v2746_v55 = vld [vmem:[#allocation2 + $0x5c4] ss:$16 sps:$4 sm:$0xff]  }
  0x3e   :  { %v45_v20 = vld [vmem:[%s3412_s0 + $0x20] sm:$0xff] }
  0x3f   :  { %1289 = vmatpush2.bf16.msra.mxu0 %v2670_v56  ;;  %v2741_v56 = vld [vmem:[#allocation2 + $0x8] ss:$16 sps:$4 sm:$0xff]  }
  0x40   :  { %1332 = vmatpush2.bf16.msra.mxu1 %v2671_v57  ;;  %1290 = vmatprep.subr.bf16.mxu0 %v2672_v58  ;;  %v2744_v57 = vld [vmem:[#allocation2 + $0x5c0] ss:$16 sps:$4 sm:$0xff]   ;;  %v2749_v58 = vld [vmem:[#allocation2 + $0x1ec] ss:$16 sps:$4 sm:$0xff]  }
  0x41   :  { %1333 = vmatprep.subr.bf16.mxu1 %v2674_v59  ;;  %v2752_v59 = vld [vmem:[#allocation2 + $0x5a4] ss:$16 sps:$4 sm:$0xff]  }
  0x43   :  { %1291 = vmatpush2.bf16.msra.mxu0 %v2676_v60  ;;  %v2747_v60 = vld [vmem:[#allocation2 + $0x1e8] ss:$16 sps:$4 sm:$0xff]  }
  0x44   :  { %1334 = vmatpush2.bf16.msra.mxu1 %v2677_v61  ;;  %1292 = vmatprep.subr.bf16.mxu0 %v2678_v62  ;;  %v2750_v61 = vld [vmem:[#allocation2 + $0x5a0] ss:$16 sps:$4 sm:$0xff]   ;;  %v2755_v62 = vld [vmem:[#allocation2 + $0x1cc] ss:$16 sps:$4 sm:$0xff]  }
  0x45   :  { %1335 = vmatprep.subr.bf16.mxu1 %v2680_v63  ;;  %v2758_v63 = vld [vmem:[#allocation2 + $0x584] ss:$16 sps:$4 sm:$0xff]  }
  0x47   :  { %1293 = vmatpush2.bf16.msra.mxu0 %v2682_v0  ;;  %v2753_v0 = vld [vmem:[#allocation2 + $0x1c8] ss:$16 sps:$4 sm:$0xff]  }
  0x48   :  { %1336 = vmatpush2.bf16.msra.mxu1 %v2683_v1  ;;  %1294 = vmatprep.subr.bf16.mxu0 %v2684_v2  ;;  %v2756_v1 = vld [vmem:[#allocation2 + $0x580] ss:$16 sps:$4 sm:$0xff]   ;;  %v2761_v2 = vld [vmem:[#allocation2 + $0x1ac] ss:$16 sps:$4 sm:$0xff]  }
  0x49   :  { %1337 = vmatprep.subr.bf16.mxu1 %v2686_v3  ;;  %v2764_v3 = vld [vmem:[#allocation2 + $0x564] ss:$16 sps:$4 sm:$0xff]  }
  0x4b   :  { %1295 = vmatpush2.bf16.msra.mxu0 %v2688_v4  ;;  %v2759_v4 = vld [vmem:[#allocation2 + $0x1a8] ss:$16 sps:$4 sm:$0xff]  }
  0x4c   :  { %1338 = vmatpush2.bf16.msra.mxu1 %v2689_v5  ;;  %1350 = vmatprep.subr.bf16.mxu0 %v2692_v10  ;;  %v2762_v5 = vld [vmem:[#allocation2 + $0x560] ss:$16 sps:$4 sm:$0xff]   ;;  %v2773_v10 = vld [vmem:[#allocation2 + $0x16c] ss:$16 sps:$4 sm:$0xff]  }
  0x4d   :  { %1407 = vmatprep.subr.bf16.mxu1 %v2695_v11  ;;  %v2776_v11 = vld [vmem:[#allocation2 + $0x524] ss:$16 sps:$4 sm:$0xff]  }
  0x4e   :  { %1297 = vmatmul.mubr.bf16.vlgmr.msra.gmra.mxu0 %v3099_v12 }
  0x4f   :  { %1340 = vmatmul.mubr.bf16.vlgmr.msra.gmra.mxu1 %v3101_v13  ;;  %1351 = vmatpush1.bf16.msra.mxu0 %v2690_v14  ;;  %v2771_v14 = vld [vmem:[#allocation2 + $0x168] ss:$16 sps:$4 sm:$0xff]  }
  0x50   :  { %1408 = vmatpush1.bf16.msra.mxu1 %v2693_v15  ;;  %1352 = vmatprep.subr.bf16.mxu0 %v2698_v16  ;;  %v2774_v15 = vld [vmem:[#allocation2 + $0x520] ss:$16 sps:$4 sm:$0xff]   ;;  %v2779_v16 = vld [vmem:[#allocation2 + $0x14c] ss:$16 sps:$4 sm:$0xff]  }
  0x51   :  { %1425 = vmatprep.mubr.bf16.mxu1 %v3025_v21  ;;  %1436 = vmatprep.subr.bf16.mxu1 %v2701_v17  ;;  %v2782_v17 = vld [vmem:[#allocation2 + $0x504] ss:$16 sps:$4 sm:$0xff]  }
  0x52   :  { %1382 = vmatprep.mubr.bf16.mxu0 %v3123_v44 }
  0x53   :  { %1353 = vmatpush1.bf16.msra.mxu0 %v2696_v18  ;;  %v2777_v18 = vld [vmem:[#allocation2 + $0x148] ss:$16 sps:$4 sm:$0xff]  }
  0x54   :  { %1354 = vmatprep.subr.bf16.mxu0 %v2704_v22  ;;  %v52_v22 = vld [vmem:[%s3412_s0 + $0x58] sm:$0xff] }
  0x57   :  { %2485 = vmatmul.mubr.msk.bf16.vlgmr.msra.gmra.mxu1 %vm1260_vm0, %v3112_v23  ;;  %1355 = vmatpush1.bf16.msra.mxu0 %v2702_v25  ;;  %v2788_v25 = vld [vmem:[#allocation2 + $0x2ec] ss:$16 sps:$4 sm:$0xff]  }
  0x58   :  { %1437 = vmatpush1.bf16.msra.mxu1 %v2699_v24  ;;  %1356 = vmatprep.subr.bf16.mxu0 %v2710_v27  ;;  %v2785_v24 = vld [vmem:[#allocation2 + $0x12c] ss:$16 sps:$4 sm:$0xff]   ;;  %v2783_v27 = vld [vmem:[#allocation2 + $0x128] ss:$16 sps:$4 sm:$0xff]  }
  0x59   :  { %1438 = vmatprep.subr.bf16.mxu1 %v2707_v26  ;;  %1468 = vmatprep.mubr.bf16.mxu1 %v3081_v53  ;;  %v2743_v53 = vld [vmem:[#allocation2 + $0xc] ss:$16 sps:$4 sm:$0xff]   ;;  %v3132_v26 = vpack.c.bf16 %v52_v22, %v45_v20  ;;  %v2867_v20 = vld [vmem:[#allocation2 + $0x568] ss:$16 sps:$4 sm:$0xff]  }
  0x5a   :  { %v2870_v22 = vld [vmem:[#allocation2 + $0x328] ss:$16 sps:$4 sm:$0xff]  }
  0x5b   :  { %1357 = vmatpush1.bf16.msra.mxu0 %v2708_v29  ;;  %v2791_v29 = vld [vmem:[#allocation2 + $0x10c] ss:$16 sps:$4 sm:$0xff]  }
  0x5c   :  { %1439 = vmatpush1.bf16.msra.mxu1 %v2705_v28  ;;  %1358 = vmatprep.subr.bf16.mxu0 %v2716_v31  ;;  %v2786_v28 = vld [vmem:[#allocation2 + $0x2e8] ss:$16 sps:$4 sm:$0xff]  }
  0x5d   :  { %1440 = vmatprep.subr.bf16.mxu1 %v2713_v30  ;;  %v2794_v30 = vld [vmem:[#allocation2 + $0x2cc] ss:$16 sps:$4 sm:$0xff]   ;;  %v2789_v31 = vld [vmem:[#allocation2 + $0x108] ss:$16 sps:$4 sm:$0xff]  }
  0x5f   :  { %1359 = vmatpush1.bf16.msra.mxu0 %v2714_v33  ;;  %v2797_v33 = vld [vmem:[#allocation2 + $0x4ec] ss:$16 sps:$4 sm:$0xff]  }
  0x60   :  { %1441 = vmatpush1.bf16.msra.mxu1 %v2711_v32  ;;  %1360 = vmatprep.subr.bf16.mxu0 %v2722_v35  ;;  %v2792_v32 = vld [vmem:[#allocation2 + $0x2c8] ss:$16 sps:$4 sm:$0xff]  }
  0x61   :  { %1442 = vmatprep.subr.bf16.mxu1 %v2719_v34  ;;  %v2800_v34 = vld [vmem:[#allocation2 + $0x2ac] ss:$16 sps:$4 sm:$0xff]   ;;  %v2795_v35 = vld [vmem:[#allocation2 + $0x4e8] ss:$16 sps:$4 sm:$0xff]  }
  0x63   :  { %1361 = vmatpush1.bf16.msra.mxu0 %v2720_v37  ;;  %v2803_v37 = vld [vmem:[#allocation2 + $0x4cc] ss:$16 sps:$4 sm:$0xff]  }
  0x64   :  { %1443 = vmatpush1.bf16.msra.mxu1 %v2717_v36  ;;  %1362 = vmatprep.subr.bf16.mxu0 %v2728_v39  ;;  %v2798_v36 = vld [vmem:[#allocation2 + $0x2a8] ss:$16 sps:$4 sm:$0xff]  }
  0x65   :  { %1444 = vmatprep.subr.bf16.mxu1 %v2725_v38  ;;  %v2806_v38 = vld [vmem:[#allocation2 + $0x28c] ss:$16 sps:$4 sm:$0xff]   ;;  %v2801_v39 = vld [vmem:[#allocation2 + $0x4c8] ss:$16 sps:$4 sm:$0xff]  }
  0x67   :  { %1363 = vmatpush1.bf16.msra.mxu0 %v2726_v43  ;;  %v2807_v43 = vld [vmem:[#allocation2 + $0x4a8] ss:$16 sps:$4 sm:$0xff]  }
  0x68   :  { %1445 = vmatpush1.bf16.msra.mxu1 %v2723_v40  ;;  %1364 = vmatprep.subr.bf16.mxu0 %v2734_v46  ;;  %v2804_v40 = vld [vmem:[#allocation2 + $0x288] ss:$16 sps:$4 sm:$0xff]   ;;  %v2818_v46 = vld [vmem:[#allocation2 + $0x24c] ss:$16 sps:$4 sm:$0xff]  }
  0x69   :  { %1446 = vmatprep.subr.bf16.mxu1 %v2731_v45  ;;  %v2810_v45 = vld [vmem:[#allocation2 + $0x268] ss:$16 sps:$4 sm:$0xff]  }
  0x6b   :  { %1365 = vmatpush1.bf16.msra.mxu0 %v2732_v48  ;;  %v2821_v48 = vld [vmem:[#allocation2 + $0x46c] ss:$16 sps:$4 sm:$0xff]  }
  0x6c   :  { %1447 = vmatpush1.bf16.msra.mxu1 %v2729_v47  ;;  %1366 = vmatprep.subr.bf16.mxu0 %v2740_v50  ;;  %v2813_v47 = vld [vmem:[#allocation2 + $0x488] ss:$16 sps:$4 sm:$0xff]  }
  0x6d   :  { %1448 = vmatprep.subr.bf16.mxu1 %v2737_v49  ;;  %v2824_v49 = vld [vmem:[#allocation2 + $0x22c] ss:$16 sps:$4 sm:$0xff]   ;;  %v2819_v50 = vld [vmem:[#allocation2 + $0x468] ss:$16 sps:$4 sm:$0xff]  }
  0x6f   :  { %1367 = vmatpush2.bf16.msra.mxu0 %v2738_v52  ;;  %v2827_v52 = vld [vmem:[#allocation2 + $0x44c] ss:$16 sps:$4 sm:$0xff]  }
  0x70   :  { %1449 = vmatpush1.bf16.msra.mxu1 %v2735_v51  ;;  %1368 = vmatprep.subr.bf16.mxu0 %v2746_v55  ;;  %v2822_v51 = vld [vmem:[#allocation2 + $0x228] ss:$16 sps:$4 sm:$0xff]  }
  0x71   :  { %1450 = vmatprep.subr.bf16.mxu1 %v2743_v53  ;;  %v2825_v53 = vld [vmem:[#allocation2 + $0x448] ss:$16 sps:$4 sm:$0xff]  }
  0x72   :  { %v2828_v55 = vld [vmem:[#allocation2 + $0x208] ss:$16 sps:$4 sm:$0xff]  }
  0x73   :  { %1369 = vmatpush2.bf16.msra.mxu0 %v2744_v57  ;;  %v2836_v57 = vld [vmem:[#allocation2 + $0x3ec] ss:$16 sps:$4 sm:$0xff]  }
  0x74   :  { %1451 = vmatpush1.bf16.msra.mxu1 %v2741_v56  ;;  %1370 = vmatprep.subr.bf16.mxu0 %v2752_v59  ;;  %v2833_v56 = vld [vmem:[#allocation2 + $0x42c] ss:$16 sps:$4 sm:$0xff]   ;;  %v2834_v59 = vld [vmem:[#allocation2 + $0x3e8] ss:$16 sps:$4 sm:$0xff]  }
  0x75   :  { %1452 = vmatprep.subr.bf16.mxu1 %v2749_v58  ;;  %v2831_v58 = vld [vmem:[#allocation2 + $0x428] ss:$16 sps:$4 sm:$0xff]  }
  0x77   :  { %1371 = vmatpush2.bf16.msra.mxu0 %v2750_v61  ;;  %v2842_v61 = vld [vmem:[#allocation2 + $0x3cc] ss:$16 sps:$4 sm:$0xff]  }
  0x78   :  { %1453 = vmatpush2.bf16.msra.mxu1 %v2747_v60  ;;  %1372 = vmatprep.subr.bf16.mxu0 %v2758_v63  ;;  %v2839_v60 = vld [vmem:[#allocation2 + $0x40c] ss:$16 sps:$4 sm:$0xff]   ;;  %v2840_v63 = vld [vmem:[#allocation2 + $0x3c8] ss:$16 sps:$4 sm:$0xff]  }
  0x79   :  { %1454 = vmatprep.subr.bf16.mxu1 %v2755_v62  ;;  %v2837_v62 = vld [vmem:[#allocation2 + $0x408] ss:$16 sps:$4 sm:$0xff]  }
  0x7b   :  { %1373 = vmatpush2.bf16.msra.mxu0 %v2756_v1  ;;  %v2848_v1 = vld [vmem:[#allocation2 + $0x3ac] ss:$16 sps:$4 sm:$0xff]  }
  0x7c   :  { %1455 = vmatpush2.bf16.msra.mxu1 %v2753_v0  ;;  %1374 = vmatprep.subr.bf16.mxu0 %v2764_v3  ;;  %v2845_v0 = vld [vmem:[#allocation2 + $0x5ec] ss:$16 sps:$4 sm:$0xff]   ;;  %v2846_v3 = vld [vmem:[#allocation2 + $0x3a8] ss:$16 sps:$4 sm:$0xff]  }
  0x7d   :  { %1456 = vmatprep.subr.bf16.mxu1 %v2761_v2  ;;  %v2843_v2 = vld [vmem:[#allocation2 + $0x5e8] ss:$16 sps:$4 sm:$0xff]  }
  0x7f   :  { %1375 = vmatpush2.bf16.msra.mxu0 %v2762_v5  ;;  %v2854_v5 = vld [vmem:[#allocation2 + $0x38c] ss:$16 sps:$4 sm:$0xff]  }
  0x80   :  { %1457 = vmatpush2.bf16.msra.mxu1 %v2759_v4  ;;  %1376 = vmatprep.subr.bf16.mxu0 %v2770_v7  ;;  %v2851_v4 = vld [vmem:[#allocation2 + $0x5cc] ss:$16 sps:$4 sm:$0xff]   ;;  %v2852_v7 = vld [vmem:[#allocation2 + $0x388] ss:$16 sps:$4 sm:$0xff]  }
  0x81   :  { %1458 = vmatprep.subr.bf16.mxu1 %v2767_v6  ;;  %v2849_v6 = vld [vmem:[#allocation2 + $0x5c8] ss:$16 sps:$4 sm:$0xff]  }
  0x83   :  { %1377 = vmatpush2.bf16.msra.mxu0 %v2768_v9  ;;  %v2860_v9 = vld [vmem:[#allocation2 + $0x36c] ss:$16 sps:$4 sm:$0xff]  }
  0x84   :  { %1459 = vmatpush2.bf16.msra.mxu1 %v2765_v8  ;;  %1378 = vmatprep.subr.bf16.mxu0 %v2776_v11  ;;  %v2857_v8 = vld [vmem:[#allocation2 + $0x5ac] ss:$16 sps:$4 sm:$0xff]   ;;  %v2858_v11 = vld [vmem:[#allocation2 + $0x368] ss:$16 sps:$4 sm:$0xff]  }
  0x85   :  { %1460 = vmatprep.subr.bf16.mxu1 %v2773_v10  ;;  %v2855_v10 = vld [vmem:[#allocation2 + $0x5a8] ss:$16 sps:$4 sm:$0xff]  }
  0x87   :  { %1379 = vmatpush2.bf16.msra.mxu0 %v2774_v15  ;;  %v2866_v15 = vld [vmem:[#allocation2 + $0x34c] ss:$16 sps:$4 sm:$0xff]  }
  0x88   :  { %1461 = vmatpush2.bf16.msra.mxu1 %v2771_v14  ;;  %1380 = vmatprep.subr.bf16.mxu0 %v2782_v17  ;;  %v2863_v14 = vld [vmem:[#allocation2 + $0x58c] ss:$16 sps:$4 sm:$0xff]   ;;  %v2864_v17 = vld [vmem:[#allocation2 + $0x348] ss:$16 sps:$4 sm:$0xff]  }
  0x89   :  { %1462 = vmatprep.subr.bf16.mxu1 %v2779_v16  ;;  %v2861_v16 = vld [vmem:[#allocation2 + $0x588] ss:$16 sps:$4 sm:$0xff]  }
  0x8b   :  { %1381 = vmatpush2.bf16.msra.mxu0 %v2780_v19  ;;  %v2872_v19 = vld [vmem:[#allocation2 + $0x32c] ss:$16 sps:$4 sm:$0xff]  }
  0x8c   :  { %1463 = vmatpush2.bf16.msra.mxu1 %v2777_v18  ;;  %1479 = vmatprep.subr.bf16.mxu0 %v2788_v25  ;;  %v2869_v18 = vld [vmem:[#allocation2 + $0x56c] ss:$16 sps:$4 sm:$0xff]  }
  0x8d   :  { %1464 = vmatprep.subr.bf16.mxu1 %v2785_v24  ;;  %v2875_v24 = vld [vmem:[#allocation2 + $0x54c] ss:$16 sps:$4 sm:$0xff]  }
  0x8e   :  { %1383 = vmatmul.mubr.bf16.vlgmr.msra.gmra.mxu0 %v3132_v26  ;;  %v2878_v25 = vld [vmem:[#allocation2 + $0x30c] ss:$16 sps:$4 sm:$0xff]  }
  0x8f   :  { %1480 = vmatpush1.bf16.msra.mxu0 %v2786_v28  ;;  %1511 = vmatprep.mubr.bf16.mxu0 %v3083_v54  ;;  %v2815_v54 = vld [vmem:[#allocation2 + $0x48c] ss:$16 sps:$4 sm:$0xff]   ;;  %v2876_v28 = vld [vmem:[#allocation2 + $0x308] ss:$16 sps:$4 sm:$0xff]  }
  0x90   :  { %1465 = vmatpush2.bf16.msra.mxu1 %v2783_v27  ;;  %1481 = vmatprep.subr.bf16.mxu0 %v2794_v30  ;;  %v2873_v27 = vld [vmem:[#allocation2 + $0x548] ss:$16 sps:$4 sm:$0xff]   ;;  %v2890_v30 = vld [vmem:[%s3415_s3 + $0x74] ss:$8 sps:$4 sm:$0xff]  }
  0x91   :  { %1466 = vmatprep.subr.bf16.mxu1 %v2791_v29  ;;  %v2881_v29 = vld [vmem:[#allocation2 + $0x52c] ss:$16 sps:$4 sm:$0xff]  }
  0x93   :  { %1482 = vmatpush1.bf16.msra.mxu0 %v2792_v32  ;;  %v2888_v32 = vld [vmem:[%s3415_s3 + $0x70] ss:$8 sps:$4 sm:$0xff]  }
  0x94   :  { %1467 = vmatpush2.bf16.msra.mxu1 %v2789_v31  ;;  %1483 = vmatprep.subr.bf16.mxu0 %v2800_v34  ;;  %v2879_v31 = vld [vmem:[#allocation2 + $0x528] ss:$16 sps:$4 sm:$0xff]   ;;  %v2893_v34 = vld [vmem:[%s3415_s3 + $0x64] ss:$8 sps:$4 sm:$0xff]  }
  0x95   :  { %1522 = vmatprep.subr.bf16.mxu1 %v2797_v33  ;;  %v2884_v33 = vld [vmem:[#allocation2 + $0x50c] ss:$16 sps:$4 sm:$0xff]  }
  0x97   :  { %1469 = vmatmul.mubr.bf16.vlgmr.msra.gmra.mxu1 %v3099_v12  ;;  %1484 = vmatpush1.bf16.msra.mxu0 %v2798_v36  ;;  %v2816_v12 = vld [vmem:[#allocation2 + $0x248] ss:$16 sps:$4 sm:$0xff]  }
  0x98   :  { %1523 = vmatpush1.bf16.msra.mxu1 %v2795_v35  ;;  %1485 = vmatprep.subr.bf16.mxu0 %v2806_v38  ;;  %v2882_v35 = vld [vmem:[#allocation2 + $0x508] ss:$16 sps:$4 sm:$0xff]   ;;  %v2896_v38 = vld [vmem:[%s3415_s3 + $0x54] ss:$8 sps:$4 sm:$0xff]  }
  0x99   :  { %1524 = vmatprep.subr.bf16.mxu1 %v2803_v37  ;;  %1554 = vmatprep.mubr.bf16.mxu1 %v3123_v44  ;;  %v2830_v44 = vld [vmem:[#allocation2 + $0x20c] ss:$16 sps:$4 sm:$0xff]   ;;  %v2891_v36 = vld [vmem:[%s3415_s3 + $0x60] ss:$8 sps:$4 sm:$0xff]  }
  0x9a   :  { %v2887_v37 = vld [vmem:[#allocation2 + $0x60c] ss:$16 sps:$4 sm:$0xff]  }
  0x9b   :  { %1486 = vmatpush1.bf16.msra.mxu0 %v2804_v40  ;;  %v2899_v40 = vld [vmem:[%s3415_s3 + $0x44] ss:$8 sps:$4 sm:$0xff]  }
  0x9c   :  { %1525 = vmatpush1.bf16.msra.mxu1 %v2801_v39  ;;  %1487 = vmatprep.subr.bf16.mxu0 %v2812_v42  ;;  %v2885_v39 = vld [vmem:[#allocation2 + $0x608] ss:$16 sps:$4 sm:$0xff]   ;;  %v2902_v42 = vld [vmem:[%s3415_s3 + $0x34] ss:$8 sps:$4 sm:$0xff]  }
  0x9d   :  { %1526 = vmatprep.subr.bf16.mxu1 %v2809_v41  ;;  %v2897_v41 = vld [vmem:[%s3415_s3 + $0x40] ss:$8 sps:$4 sm:$0xff]  }
  0x9f   :  { %1488 = vmatpush1.bf16.msra.mxu0 %v2810_v45  ;;  %v2938_v45 = vld [vmem:[%s3415_s3 + $0x174] ss:$8 sps:$4 sm:$0xff]  }
  0xa0   :  { %1527 = vmatpush1.bf16.msra.mxu1 %v2807_v43  ;;  %1489 = vmatprep.subr.bf16.mxu0 %v2818_v46  ;;  %v2900_v43 = vld [vmem:[%s3415_s3 + $0x30] ss:$8 sps:$4 sm:$0xff]   ;;  %v2903_v46 = vld [vmem:[%s3415_s3 + $0x20] ss:$8 sps:$4 sm:$0xff]  }
  0xa1   :  { %1528 = vmatprep.subr.bf16.mxu1 %v2815_v54  ;;  %v2941_v54 = vld [vmem:[%s3415_s3 + $0x164] ss:$8 sps:$4 sm:$0xff]  }
  0xa3   :  { %1490 = vmatpush1.bf16.msra.mxu0 %v2816_v12  ;;  %v2944_v12 = vld [vmem:[%s3415_s3 + $0x154] ss:$8 sps:$4 sm:$0xff]  }
  0xa4   :  { %1529 = vmatpush1.bf16.msra.mxu1 %v2813_v47  ;;  %1491 = vmatprep.subr.bf16.mxu0 %v2824_v49  ;;  %v2939_v47 = vld [vmem:[%s3415_s3 + $0x160] ss:$8 sps:$4 sm:$0xff]   ;;  %v2911_v49 = vld [vmem:[%s3415_s3 + $0x4] ss:$8 sps:$4 sm:$0xff]  }
  0xa5   :  { %1530 = vmatprep.subr.bf16.mxu1 %v2821_v48  ;;  %v2906_v48 = vld [vmem:[%s3415_s3 + $0x10] ss:$8 sps:$4 sm:$0xff]  }
  0xa7   :  { %1492 = vmatpush1.bf16.msra.mxu0 %v2822_v51  ;;  %v2947_v51 = vld [vmem:[%s3415_s3 + $0x144] ss:$8 sps:$4 sm:$0xff]  }
  0xa8   :  { %1531 = vmatpush1.bf16.msra.mxu1 %v2819_v50  ;;  %1493 = vmatprep.subr.bf16.mxu0 %v2830_v44  ;;  %v2942_v50 = vld [vmem:[%s3415_s3 + $0x150] ss:$8 sps:$4 sm:$0xff]   ;;  %v2914_v44 = vld [vmem:[%s3415_s3 + $0xf4] ss:$8 sps:$4 sm:$0xff]  }
  0xa9   :  { %1532 = vmatprep.subr.bf16.mxu1 %v2827_v52  ;;  %v2909_v52 = vld [vmem:[%s3415_s3] ss:$8 sps:$4 sm:$0xff]  }
  0xab   :  { %1494 = vmatpush1.bf16.msra.mxu0 %v2828_v55  ;;  %v2950_v55 = vld [vmem:[%s3415_s3 + $0x134] ss:$8 sps:$4 sm:$0xff]  }
  0xac   :  { %1533 = vmatpush1.bf16.msra.mxu1 %v2825_v53  ;;  %1495 = vmatprep.subr.bf16.mxu0 %v2836_v57  ;;  %v2945_v53 = vld [vmem:[%s3415_s3 + $0x140] ss:$8 sps:$4 sm:$0xff]   ;;  %v2917_v57 = vld [vmem:[%s3415_s3 + $0xe4] ss:$8 sps:$4 sm:$0xff]  }
  0xad   :  { %1534 = vmatprep.subr.bf16.mxu1 %v2833_v56  ;;  %v2912_v56 = vld [vmem:[%s3415_s3 + $0xf0] ss:$8 sps:$4 sm:$0xff]  }
  0xaf   :  { %1496 = vmatpush2.bf16.msra.mxu0 %v2834_v59  ;;  %v2953_v59 = vld [vmem:[%s3415_s3 + $0x124] ss:$8 sps:$4 sm:$0xff]  }
  0xb0   :  { %1535 = vmatpush1.bf16.msra.mxu1 %v2831_v58  ;;  %1497 = vmatprep.subr.bf16.mxu0 %v2842_v61  ;;  %v2948_v58 = vld [vmem:[%s3415_s3 + $0x130] ss:$8 sps:$4 sm:$0xff]   ;;  %v2920_v61 = vld [vmem:[%s3415_s3 + $0xd4] ss:$8 sps:$4 sm:$0xff]  }
  0xb1   :  { %1536 = vmatprep.subr.bf16.mxu1 %v2839_v60  ;;  %v2915_v60 = vld [vmem:[%s3415_s3 + $0xe0] ss:$8 sps:$4 sm:$0xff]  }
  0xb3   :  { %1498 = vmatpush2.bf16.msra.mxu0 %v2840_v63  ;;  %v2956_v63 = vld [vmem:[%s3415_s3 + $0x114] ss:$8 sps:$4 sm:$0xff]  }
  0xb4   :  { %1537 = vmatpush1.bf16.msra.mxu1 %v2837_v62  ;;  %1499 = vmatprep.subr.bf16.mxu0 %v2848_v1  ;;  %v2951_v62 = vld [vmem:[%s3415_s3 + $0x120] ss:$8 sps:$4 sm:$0xff]   ;;  %v2923_v1 = vld [vmem:[%s3415_s3 + $0xc4] ss:$8 sps:$4 sm:$0xff]  }
  0xb5   :  { %1538 = vmatprep.subr.bf16.mxu1 %v2845_v0  ;;  %v2918_v0 = vld [vmem:[%s3415_s3 + $0xd0] ss:$8 sps:$4 sm:$0xff]  }
  0xb7   :  { %1500 = vmatpush2.bf16.msra.mxu0 %v2846_v3  ;;  %v2959_v3 = vld [vmem:[%s3415_s3 + $0x104] ss:$8 sps:$4 sm:$0xff]  }
  0xb8   :  { %1539 = vmatpush2.bf16.msra.mxu1 %v2843_v2  ;;  %1501 = vmatprep.subr.bf16.mxu0 %v2854_v5  ;;  %v2954_v2 = vld [vmem:[%s3415_s3 + $0x110] ss:$8 sps:$4 sm:$0xff]   ;;  %v2926_v5 = vld [vmem:[%s3415_s3 + $0xb4] ss:$8 sps:$4 sm:$0xff]  }
  0xb9   :  { %1540 = vmatprep.subr.bf16.mxu1 %v2851_v4  ;;  %v2921_v4 = vld [vmem:[%s3415_s3 + $0xc0] ss:$8 sps:$4 sm:$0xff]  }
  0xbb   :  { %1502 = vmatpush2.bf16.msra.mxu0 %v2852_v7  ;;  %v2962_v7 = vld [vmem:[%s3415_s3 + $0x1f4] ss:$8 sps:$4 sm:$0xff]  }
  0xbc   :  { %1541 = vmatpush2.bf16.msra.mxu1 %v2849_v6  ;;  %1503 = vmatprep.subr.bf16.mxu0 %v2860_v9  ;;  %v2957_v6 = vld [vmem:[%s3415_s3 + $0x100] ss:$8 sps:$4 sm:$0xff]   ;;  %v2929_v9 = vld [vmem:[%s3415_s3 + $0xa4] ss:$8 sps:$4 sm:$0xff]  }
  0xbd   :  { %1542 = vmatprep.subr.bf16.mxu1 %v2857_v8  ;;  %v2924_v8 = vld [vmem:[%s3415_s3 + $0xb0] ss:$8 sps:$4 sm:$0xff]  }
  0xbf   :  { %1504 = vmatpush2.bf16.msra.mxu0 %v2858_v11  ;;  %v2927_v11 = vld [vmem:[%s3415_s3 + $0xa0] ss:$8 sps:$4 sm:$0xff]  }
  0xc0   :  { %1543 = vmatpush2.bf16.msra.mxu1 %v2855_v10  ;;  %1505 = vmatprep.subr.bf16.mxu0 %v2866_v15  ;;  %v2960_v10 = vld [vmem:[%s3415_s3 + $0x1f0] ss:$8 sps:$4 sm:$0xff]  }
  0xc1   :  { %1544 = vmatprep.subr.bf16.mxu1 %v2863_v14  ;;  %v2932_v14 = vld [vmem:[%s3415_s3 + $0x94] ss:$8 sps:$4 sm:$0xff]   ;;  %v2930_v15 = vld [vmem:[%s3415_s3 + $0x90] ss:$8 sps:$4 sm:$0xff]  }
  0xc3   :  { %1506 = vmatpush2.bf16.msra.mxu0 %v2864_v17  ;;  %v2933_v17 = vld [vmem:[%s3415_s3 + $0x80] ss:$8 sps:$4 sm:$0xff]  }
  0xc4   :  { %1545 = vmatpush2.bf16.msra.mxu1 %v2861_v16  ;;  %1507 = vmatprep.subr.bf16.mxu0 %v2872_v19  ;;  %v2935_v16 = vld [vmem:[%s3415_s3 + $0x84] ss:$8 sps:$4 sm:$0xff]   ;;  %v2963_v19 = vld [vmem:[%s3415_s3 + $0x1e0] ss:$8 sps:$4 sm:$0xff]  }
  0xc5   :  { %1546 = vmatprep.subr.bf16.mxu1 %v2869_v18  ;;  %v2965_v18 = vld [vmem:[%s3415_s3 + $0x1e4] ss:$8 sps:$4 sm:$0xff]  }
  0xc7   :  { %1508 = vmatpush2.bf16.msra.mxu0 %v2870_v22  ;;  %v2966_v22 = vld [vmem:[%s3415_s3 + $0x1d0] ss:$8 sps:$4 sm:$0xff]  }
  0xc8   :  { %1547 = vmatpush2.bf16.msra.mxu1 %v2867_v20  ;;  %1509 = vmatprep.subr.bf16.mxu0 %v2878_v25  ;;  %v2968_v20 = vld [vmem:[%s3415_s3 + $0x1d4] ss:$8 sps:$4 sm:$0xff]   ;;  %v2969_v25 = vld [vmem:[%s3415_s3 + $0x1c0] ss:$8 sps:$4 sm:$0xff]  }
  0xc9   :  { %1548 = vmatprep.subr.bf16.mxu1 %v2875_v24  ;;  %v2971_v24 = vld [vmem:[%s3415_s3 + $0x1c4] ss:$8 sps:$4 sm:$0xff]  }
  0xcb   :  { %1510 = vmatpush2.bf16.msra.mxu0 %v2876_v28  ;;  %v2972_v28 = vld [vmem:[%s3415_s3 + $0x1b0] ss:$8 sps:$4 sm:$0xff]  }
  0xcc   :  { %1549 = vmatpush2.bf16.msra.mxu1 %v2873_v27  ;;  %2016 = vmatprep.subr.bf16.mxu0 %v2890_v30  ;;  %v2974_v27 = vld [vmem:[%s3415_s3 + $0x1b4] ss:$8 sps:$4 sm:$0xff]   ;;  %v2975_v30 = vld [vmem:[%s3415_s3 + $0x1a0] ss:$8 sps:$4 sm:$0xff]  }
  0xcd   :  { %1550 = vmatprep.subr.bf16.mxu1 %v2881_v29  ;;  %v2977_v29 = vld [vmem:[%s3415_s3 + $0x1a4] ss:$8 sps:$4 sm:$0xff]  }
  0xce   :  { %1512 = vmatmul.mubr.bf16.vlgmr.msra.gmra.mxu0 %v3101_v13  ;;  %v2894_v13 = vld [vmem:[%s3415_s3 + $0x50] ss:$8 sps:$4 sm:$0xff]  }
  0xcf   :  { %2017 = vmatpush1.bf16.msra.mxu0 %v2888_v32  ;;  %v2978_v32 = vld [vmem:[%s3415_s3 + $0x190] ss:$8 sps:$4 sm:$0xff]  }
  0xd0   :  { %1551 = vmatpush2.bf16.msra.mxu1 %v2879_v31  ;;  %2018 = vmatprep.subr.bf16.mxu0 %v2893_v34  ;;  %v2980_v31 = vld [vmem:[%s3415_s3 + $0x194] ss:$8 sps:$4 sm:$0xff]   ;;  %v2981_v34 = vld [vmem:[%s3415_s3 + $0x180] ss:$8 sps:$4 sm:$0xff]  }
  0xd1   :  { %1552 = vmatprep.subr.bf16.mxu1 %v2884_v33  ;;  %v2983_v33 = vld [vmem:[%s3415_s3 + $0x184] ss:$8 sps:$4 sm:$0xff]  }
  0xd3   :  { %2019 = vmatpush1.bf16.msra.mxu0 %v2891_v36  ;;  %v260_v36 = vlaneseq }
  0xd4   :  { %1553 = vmatpush2.bf16.msra.mxu1 %v2882_v35  ;;  %2020 = vmatprep.subr.bf16.mxu0 %v2896_v38 }
  0xd5   :  { %1579 = vmatprep.subr.bf16.mxu1 %v2887_v37  ;;  %v3335_v38 = vshrl.u32 %v260_v36, 7 }
  0xd7   :  { %1555 = vmatmul.mubr.bf16.vlgmr.msra.gmra.mxu1 %v3132_v26  ;;  %2021 = vmatpush1.bf16.msra.mxu0 %v2894_v13  ;;  %v2936_v26 = vld [vmem:[%s3415_s3 + $0x170] ss:$8 sps:$4 sm:$0xff]  }
  0xd8   :  { %1580 = vmatpush1.bf16.msra.mxu1 %v2885_v39  ;;  %1597 = vmatprep.mubr.bf16.mxu1 %v3025_v21  ;;  %v2905_v21 = vld [vmem:[%s3415_s3 + $0x24] ss:$8 sps:$4 sm:$0xff]  }
  0xd9   :  { %2022 = vmatprep.subr.bf16.mxu0 %v2899_v40  ;;  %2059 = vmatprep.subr.bf16.mxu1 %v2938_v45  ;;  %v266_v40 = vsub.s32 1, %v3335_v38 }
  0xdb   :  { %2023 = vmatpush1.bf16.msra.mxu0 %v2897_v41  ;;  %v262_v41 = vsub.s32 0, %v3335_v38 }
  0xdc   :  { %2024 = vmatprep.subr.bf16.mxu0 %v2902_v42 }
  0xdf   :  { %2486 = vmatmul.mubr.msk.bf16.vlgmr.msra.gmra.mxu1 %vm1260_vm0, %v3112_v23  ;;  %2025 = vmatpush1.bf16.msra.mxu0 %v2900_v43  ;;  %v2908_v23 = vld [vmem:[%s3415_s3 + $0x14] ss:$8 sps:$4 sm:$0xff]   ;;  %v258_v43 = vld [vmem:[%s3414_s2] ss:$8 sm:$0xf] }
  0xe0   :  { %2026 = vmatprep.subr.bf16.mxu0 %v2905_v21  ;;  %2060 = vmatpush1.bf16.msra.mxu1 %v2936_v26  ;;  %v267_v26 = vrot.slane %v258_v43, %v266_v40  ;;  %v263_v45 = vrot.slane %v258_v43, %v262_v41 }
  0xe1   :  { %2061 = vmatprep.subr.bf16.mxu1 %v2941_v54 }
  0xe3   :  { %2027 = vmatpush1.bf16.msra.mxu0 %v2903_v46 }
  0xe4   :  { %2028 = vmatprep.subr.bf16.mxu0 %v2908_v23  ;;  %2062 = vmatpush1.bf16.msra.mxu1 %v2939_v47 }
  0xe5   :  { %2063 = vmatprep.subr.bf16.mxu1 %v2944_v12 }
  0xe7   :  { %2029 = vmatpush1.bf16.msra.mxu0 %v2906_v48 }
  0xe8   :  { %2030 = vmatprep.subr.bf16.mxu0 %v2911_v49  ;;  %2064 = vmatpush1.bf16.msra.mxu1 %v2942_v50 }
  0xe9   :  { %2065 = vmatprep.subr.bf16.mxu1 %v2947_v51 }
  0xeb   :  { %2031 = vmatpush1.bf16.msra.mxu0 %v2909_v52 }
  0xec   :  { %2032 = vmatprep.subr.bf16.mxu0 %v2914_v44  ;;  %2066 = vmatpush1.bf16.msra.mxu1 %v2945_v53 }
  0xed   :  { %2067 = vmatprep.subr.bf16.mxu1 %v2950_v55 }
  0xef   :  { %2033 = vmatpush2.bf16.msra.mxu0 %v2912_v56 }
  0xf0   :  { %2034 = vmatprep.subr.bf16.mxu0 %v2917_v57  ;;  %2068 = vmatpush1.bf16.msra.mxu1 %v2948_v58 }
  0xf1   :  { %2069 = vmatprep.subr.bf16.mxu1 %v2953_v59 }
  0xf3   :  { %2035 = vmatpush2.bf16.msra.mxu0 %v2915_v60 }
  0xf4   :  { %2036 = vmatprep.subr.bf16.mxu0 %v2920_v61  ;;  %2070 = vmatpush1.bf16.msra.mxu1 %v2951_v62 }
  0xf5   :  { %2071 = vmatprep.subr.bf16.mxu1 %v2956_v63 }
  0xf7   :  { %2037 = vmatpush2.bf16.msra.mxu0 %v2918_v0 }
  0xf8   :  { %2038 = vmatprep.subr.bf16.mxu0 %v2923_v1  ;;  %2072 = vmatpush1.bf16.msra.mxu1 %v2954_v2 }
  0xf9   :  { %2073 = vmatprep.subr.bf16.mxu1 %v2959_v3 }
  0xfb   :  { %2039 = vmatpush2.bf16.msra.mxu0 %v2921_v4 }
  0xfc   :  { %2040 = vmatprep.subr.bf16.mxu0 %v2926_v5  ;;  %2074 = vmatpush1.bf16.msra.mxu1 %v2957_v6 }
  0xfd   :  { %2075 = vmatprep.subr.bf16.mxu1 %v2962_v7 }
  0xff   :  { %2041 = vmatpush2.bf16.msra.mxu0 %v2924_v8 }
 0x100   :  { %2042 = vmatprep.subr.bf16.mxu0 %v2929_v9  ;;  %2076 = vmatpush2.bf16.msra.mxu1 %v2960_v10 }
 0x101   :  { %2077 = vmatprep.subr.bf16.mxu1 %v2965_v18  ;;  %v274_v18 = vsub.s32 3, %v3335_v38 }
 0x103   :  { %2043 = vmatpush2.bf16.msra.mxu0 %v2927_v11 }
 0x104   :  { %2044 = vmatprep.subr.bf16.mxu0 %v2932_v14  ;;  %2078 = vmatpush2.bf16.msra.mxu1 %v2963_v19  ;;  %v270_v19 = vsub.s32 2, %v3335_v38 }
 0x105   :  { %2079 = vmatprep.subr.bf16.mxu1 %v2968_v20 }
 0x107   :  { %2045 = vmatpush2.bf16.msra.mxu0 %v2930_v15 }
 0x108   :  { %2046 = vmatprep.subr.bf16.mxu0 %v2935_v16  ;;  %2080 = vmatpush2.bf16.msra.mxu1 %v2966_v22 }
 0x109   :  { %2081 = vmatprep.subr.bf16.mxu1 %v2971_v24 }
 0x10b   :  { %2047 = vmatpush2.bf16.msra.mxu0 %v2933_v17 }
 0x10c   :  { %2082 = vmatpush2.bf16.msra.mxu1 %v2969_v25  ;;  %v275_v25 = vrot.slane %v258_v43, %v274_v18 }
 0x10d   :  { %2083 = vmatprep.subr.bf16.mxu1 %v2974_v27  ;;  %v271_v27 = vrot.slane %v258_v43, %v270_v19 }
 0x10e   :  { %v1298_v39 = vpop.f32.mrf.mxu0 }
 0x10f   :  { %v1341_v35 = vpop.f32.mrf.mxu1  ;;  %v1299_v47 = vadd.f32 %v1298_v39, %v263_v45 }
 0x110   :  { %2084 = vmatpush2.bf16.msra.mxu1 %v2972_v28  ;;  %v1300_v42 = vpop.f32.mrf.mxu0 }
 0x111   :  { %2085 = vmatprep.subr.bf16.mxu1 %v2977_v29  ;;  %v1343_v37 = vpop.f32.mrf.mxu1  ;;  %v1301_v23 = vadd.f32 %v1300_v42, %v267_v26  ;;  %v1342_v44 = vadd.f32 %v1341_v35, %v1299_v47 }
 0x112   :  { %v1302_v54 = vpop.f32.mrf.mxu0 }
 0x113   :  { %v1345_v13 = vpop.f32.mrf.mxu1  ;;  %v1303_v48 = vadd.f32 %v1302_v54, %v263_v45  ;;  %v1344_v51 = vadd.f32 %v1343_v37, %v1301_v23 }
 0x114   :  { %2086 = vmatpush2.bf16.msra.mxu1 %v2975_v30  ;;  %v1304_v12 = vpop.f32.mrf.mxu0 }
 0x115   :  { %2087 = vmatprep.subr.bf16.mxu1 %v2980_v31  ;;  %v1347_v21 = vpop.f32.mrf.mxu1  ;;  %v1305_v52 = vadd.f32 %v1304_v12, %v267_v26  ;;  %v1346_v55 = vadd.f32 %v1345_v13, %v1303_v48 }
 0x117   :  { %v1427_v46 = vpop.f32.mrf.mxu1  ;;  %v1348_v60 = vadd.f32 %v1347_v21, %v1305_v52  ;;  %v2986_v52 = vld [vmem:[%s3417_s5 + $0x70] sm:$0xff]  }
 0x118   :  { %2088 = vmatpush2.bf16.msra.mxu1 %v2978_v32 }
 0x119   :  { %2089 = vmatprep.subr.bf16.mxu1 %v2983_v33  ;;  %v1429_v49 = vpop.f32.mrf.mxu1 }
 0x11b   :  { %v1431_v57 = vpop.f32.mrf.mxu1 }
 0x11c   :  { %2090 = vmatpush2.bf16.msra.mxu1 %v2981_v34 }
 0x11d   :  { %v1433_v2 = vpop.f32.mrf.mxu1 }
 0x14e   :  { %v1384_v50 = vpop.f32.mrf.mxu0 }
 0x14f   :  { %v1385_v58 = vadd.f32 %v1384_v50, %v1342_v44  ;;  %v2984_v50 = vld [vmem:[%s3417_s5 + $0x78] sm:$0xff]  }
 0x150   :  { %v1386_v53 = vpop.f32.mrf.mxu0  ;;  %2568 = vmatprep.subr.bf16.mxu0 %v2984_v50 }
 0x151   :  { %v1387_v56 = vadd.f32 %v1386_v53, %v1344_v51  ;;  %v1428_v3 = vadd.f32 %v1427_v46, %v1385_v58  ;;  %v2985_v51 = vld [vmem:[%s3417_s5 + $0x38] sm:$0xff]  }
 0x152   :  { %v1388_v59 = vpop.f32.mrf.mxu0 }
 0x153   :  { %v1389_v61 = vadd.f32 %v1388_v59, %v1346_v55  ;;  %v1430_v63 = vadd.f32 %v1429_v49, %v1387_v56  ;;  %v1608_v8 = vmax.f32 %v1428_v3, 0.0  ;;  %v2988_v59 = vld [vmem:[%s3417_s5 + $0x68] sm:$0xff]   ;;  %v2995_v3 = vld [vmem:[%s3417_s5 + $0x10] sm:$0xff]  }
 0x154   :  { %v1390_v62 = vpop.f32.mrf.mxu0 }
 0x155   :  { %v1432_v0 = vadd.f32 %v1431_v57, %v1389_v61  ;;  %v1391_v1 = vadd.f32 %v1390_v62, %v1348_v60  ;;  %v1609_v6 = vmax.f32 %v1430_v63, 0.0  ;;  %v2987_v57 = vld [vmem:[%s3417_s5 + $0x30] sm:$0xff]   ;;  %v2989_v61 = vld [vmem:[%s3417_s5 + $0x28] sm:$0xff]   ;;  %v2990_v62 = vld [vmem:[%s3417_s5 + $0x60] sm:$0xff]  }
 0x156   :  { %v2991_v63 = vld [vmem:[%s3417_s5 + $0x20] sm:$0xff]  }
 0x157   :  { %v1434_v4 = vadd.f32 %v1433_v2, %v1391_v1  ;;  %v1612_v5 = vmax.f32 %v1432_v0, 0.0  ;;  %v1470_v11 = vpop.f32.mrf.mxu1  ;;  %v2992_v0 = vld [vmem:[%s3417_s5 + $0x58] sm:$0xff]   ;;  %v2994_v2 = vld [vmem:[%s3417_s5 + $0x50] sm:$0xff]  }
 0x158   :  { %v1471_v33 = vadd.f32 %v1470_v11, %v271_v27  ;;  %v2993_v1 = vld [vmem:[%s3417_s5 + $0x18] sm:$0xff]  }
 0x159   :  { %v1613_v7 = vmax.f32 %v1434_v4, 0.0  ;;  %v1616_v10 = vpack.c.bf16 %v1612_v5, %v1608_v8  ;;  %v1472_v14 = vpop.f32.mrf.mxu1  ;;  %v2996_v4 = vld [vmem:[%s3417_s5 + $0x48] sm:$0xff]  }
 0x15a   :  { %v1473_v31 = vadd.f32 %v1472_v14, %v275_v25  ;;  %v2997_v5 = vld [vmem:[%s3417_s5 + $0x8] sm:$0xff]  }
 0x15b   :  { %v1617_v9 = vpack.c.bf16 %v1613_v7, %v1609_v6  ;;  %v1474_v15 = vpop.f32.mrf.mxu1  ;;  %v2998_v6 = vld [vmem:[%s3417_s5 + $0x40] sm:$0xff]  }
 0x15c   :  { %v1475_v32 = vadd.f32 %v1474_v15, %v271_v27  ;;  %v2999_v7 = vld [vmem:[%s3417_s5] sm:$0xff]  }
 0x15d   :  { %2048 = vmatprep.mubr.bf16.mxu0 %v1617_v9  ;;  %v1476_v17 = vpop.f32.mrf.mxu1 }
 0x15e   :  { %2049 = vmatmul.mubr.bf16.vlgmr.msra.gmra.mxu0 %v1616_v10  ;;  %v1477_v36 = vadd.f32 %v1476_v17, %v275_v25  ;;  %v1684_v10 = vld [vmem:[%s3416_s4] ss:$8 sm:$0x3] }
 0x15f   :  { %2569 = vmatpush3.bf16.msra.mxu0 %v2985_v51  ;;  %v1693_v14 = vrot.slane %v1684_v10, %v266_v40  ;;  %v1689_v15 = vrot.slane %v1684_v10, %v262_v41 }
 0x160   :  { %2570 = vmatprep.subr.bf16.mxu0 %v2986_v52 }
 0x163   :  { %2571 = vmatpush3.bf16.msra.mxu0 %v2987_v57 }
 0x164   :  { %2572 = vmatprep.subr.bf16.mxu0 %v2988_v59 }
 0x167   :  { %2573 = vmatpush3.bf16.msra.mxu0 %v2989_v61 }
 0x168   :  { %2574 = vmatprep.subr.bf16.mxu0 %v2990_v62 }
 0x16b   :  { %2575 = vmatpush3.bf16.msra.mxu0 %v2991_v63 }
 0x16c   :  { %2576 = vmatprep.subr.bf16.mxu0 %v2992_v0 }
 0x16f   :  { %2577 = vmatpush3.bf16.msra.mxu0 %v2993_v1 }
 0x170   :  { %2578 = vmatprep.subr.bf16.mxu0 %v2994_v2 }
 0x173   :  { %2579 = vmatpush3.bf16.msra.mxu0 %v2995_v3 }
 0x174   :  { %2580 = vmatprep.subr.bf16.mxu0 %v2996_v4 }
 0x177   :  { %2581 = vmatpush3.bf16.msra.mxu0 %v2997_v5 }
 0x178   :  { %2582 = vmatprep.subr.bf16.mxu0 %v2998_v6 }
 0x17b   :  { %2583 = vmatpush3.bf16.msra.mxu0 %v2999_v7 }
 0x18e   :  { %v1513_v16 = vpop.f32.mrf.mxu0 }
 0x18f   :  { %v1514_v13 = vadd.f32 %v1513_v16, %v1471_v33 }
 0x190   :  { %v1515_v20 = vpop.f32.mrf.mxu0 }
 0x191   :  { %v1516_v37 = vadd.f32 %v1515_v20, %v1473_v31 }
 0x192   :  { %v1517_v28 = vpop.f32.mrf.mxu0 }
 0x193   :  { %v1518_v39 = vadd.f32 %v1517_v28, %v1475_v32 }
 0x194   :  { %v1519_v34 = vpop.f32.mrf.mxu0 }
 0x195   :  { %v1520_v21 = vadd.f32 %v1519_v34, %v1477_v36  ;;  %v2551_v36 = vld [vmem:[%s3418_s6] ss:$0 sm:$0xff] }
 0x197   :  { %v1556_v22 = vpop.f32.mrf.mxu1 }
 0x198   :  { %v1557_v54 = vadd.f32 %v1556_v22, %v1514_v13 }
 0x199   :  { %v1558_v24 = vpop.f32.mrf.mxu1 }
 0x19a   :  { %v1559_v26 = vadd.f32 %v1558_v24, %v1516_v37 }
 0x19b   :  { %v1560_v29 = vpop.f32.mrf.mxu1 }
 0x19c   :  { %v1561_v45 = vadd.f32 %v1560_v29, %v1518_v39 }
 0x19d   :  { %v1562_v30 = vpop.f32.mrf.mxu1 }
 0x19e   :  { %v1563_v23 = vadd.f32 %v1562_v30, %v1520_v21 }
 0x19f   :  { %v1599_v35 = vpop.f32.mrf.mxu1 }
 0x1a0   :  { %v1600_v12 = vadd.f32 %v1599_v35, %v1557_v54 }
 0x1a1   :  { %v1601_v42 = vpop.f32.mrf.mxu1 }
 0x1a2   :  { %v1602_v43 = vadd.f32 %v1601_v42, %v1559_v26  ;;  %v1610_v56 = vmax.f32 %v1600_v12, 0.0 }
 0x1a3   :  { %v1603_v46 = vpop.f32.mrf.mxu1 }
 0x1a4   :  { %v1604_v47 = vadd.f32 %v1603_v46, %v1561_v45  ;;  %v1611_v53 = vmax.f32 %v1602_v43, 0.0 }
 0x1a5   :  { %v1605_v48 = vpop.f32.mrf.mxu1 }
 0x1a6   :  { %v1606_v49 = vadd.f32 %v1605_v48, %v1563_v23  ;;  %v1614_v44 = vmax.f32 %v1604_v47, 0.0 }
 0x1a8   :  { %v1615_v55 = vmax.f32 %v1606_v49, 0.0  ;;  %v1618_v60 = vpack.c.bf16 %v1614_v44, %v1610_v56 }
 0x1aa   :  { %v1619_v58 = vpack.c.bf16 %v1615_v55, %v1611_v53 }
 0x1ac   :  { %2091 = vmatprep.mubr.bf16.mxu1 %v1619_v58 }
 0x1ad   :  { %2092 = vmatmul.mubr.bf16.vlgmr.msra.gmra.mxu1 %v1618_v60 }
 0x21e   :  { %v2050_v8 = vpop.f32.mrf.mxu0 }
 0x21f   :  { %v2051_v22 = vadd.f32 %v2050_v8, %v1689_v15 }
 0x220   :  { %v2052_v9 = vpop.f32.mrf.mxu0 }
 0x221   :  { %v2053_v19 = vadd.f32 %v2052_v9, %v1693_v14 }
 0x222   :  { %v2054_v11 = vpop.f32.mrf.mxu0 }
 0x223   :  { %v2055_v20 = vadd.f32 %v2054_v11, %v1689_v15 }
 0x224   :  { %v2056_v17 = vpop.f32.mrf.mxu0 }
 0x225   :  { %v2057_v25 = vadd.f32 %v2056_v17, %v1693_v14 }
 0x26d   :  { %v2093_v16 = vpop.f32.mrf.mxu1 }
 0x26e   :  { %v2094_v29 = vadd.f32 %v2093_v16, %v2051_v22 }
 0x26f   :  { %v2095_v18 = vpop.f32.mrf.mxu1 }
 0x270   :  { %v2096_v27 = vadd.f32 %v2095_v18, %v2053_v19  ;;  %v2102_v40 = vmax.f32 %v2094_v29, 0.0 }
 0x271   :  { %v2097_v24 = vpop.f32.mrf.mxu1 }
 0x272   :  { %v2098_v28 = vadd.f32 %v2097_v24, %v2055_v20  ;;  %v2103_v33 = vmax.f32 %v2096_v27, 0.0 }
 0x273   :  { %v2099_v30 = vpop.f32.mrf.mxu1 }
 0x274   :  { %v2100_v31 = vadd.f32 %v2099_v30, %v2057_v25  ;;  %v2104_v32 = vmax.f32 %v2098_v28, 0.0 }
 0x276   :  { %v2105_v34 = vmax.f32 %v2100_v31, 0.0  ;;  %v2106_v38 = vpack.c.bf16 %v2104_v32, %v2102_v40 }
 0x278   :  { %v2107_v35 = vpack.c.bf16 %v2105_v34, %v2103_v33 }
 0x27a   :  { %2273 = vmatprep.mubr.bf16.mxu0 %v2107_v35 }
 0x27b   :  { %2274 = vmatmul.mubr.bf16.vlgmr.msra.gmra.mxu0 %v2106_v38 }
 0x33b   :  { %v2584_v41 = vpop.f32.mrf.mxu0 }
 0x33d   :  { %v2585_v37 = vpop.f32.mrf.mxu0 }
 0x33e   :  { %v2586_v39 = vadd.f32 %v2585_v37, %v2584_v41 }
 0x33f   :  { %v2587_v13 = vpop.f32.mrf.mxu0 }
 0x340   :  { %v2276_v42 = vadd.f32 %v2586_v39, %v2551_v36 }
 0x341   :  { %v2588_v21 = vpop.f32.mrf.mxu0 }
 0x342   :  { %2282 = vst [vmem:[%s3419_s7] sm:$0xff] %v2276_v42  ;;  %v2589_v26 = vadd.f32 %v2588_v21, %v2587_v13 }
 0x344   :  { %v2279_v45 = vadd.f32 %v2589_v26, %v2551_v36 }
 0x346   :  { %2283 = vst [vmem:[%s3419_s7 + $0x8] sm:$0xff] %v2279_v45 }
 0x347   :  { %2288 = vsyncpa [#allocation3], 1 }

</bundles_post_ra>
